<compile_context>
chip_gen: v6e
topology: v6e:2x2x1
jax: 0.10.0
libtpu: 0.0.40
codegen_flags: <defaults>
</compile_context>

<pallas_src>
import functools

import jax
import jax.numpy as jnp
from jax import lax
from jax.experimental import pallas as pl
from jax.experimental.pallas import tpu as pltpu


def _round_up(n, m):
    return ((n + m - 1) // m) * m


# Python-unroll the middle block up to this many repeats; above it, use
# lax.fori_loop to keep code size / vreg pressure bounded.
_MID_UNROLL_MAX = 6


# ---------------------------------------------------------------------------
# Kernel
# ---------------------------------------------------------------------------
def _nnmodel_kernel(layer_num,
                    x_ref, w1_ref, b1_ref, wm_ref, bm_ref, w3_ref, b3_ref,
                    o_ref):
    """Fused MLP forward for one batch tile.

    x_ref : (tb, F)   f32 input tile (unpadded features)
    w1    : (F,  Hp)  bf16 (BN1 + weight_norm folded, hidden cols zero-padded)
    wm    : (Hp, Hp)  bf16 shared middle weight
    w3    : (Hp, Tp)  bf16
    b*    : (1, Hp/Tp) f32 biases
    o_ref : (tb, Tp)  bf16 output tile (clamped to [-5, 5])
    """
    x = x_ref[...].astype(w1_ref.dtype)

    # --- [bn1 + dropout1 + dense1] (folded) + relu ---
    h = jnp.dot(x, w1_ref[...], preferred_element_type=jnp.float32) + b1_ref[...]
    h = jnp.maximum(h, 0.0)

    # --- middle block repeated (layer_num - 2) times, shared weights ---
    # Hoist the shared weight load and the bias broadcast out of the loop
    # (JAX does not CSE broadcast_in_dim).
    wm = wm_ref[...]
    bm = jnp.broadcast_to(bm_ref[...], h.shape)

    def mid(hh):
        hh = jnp.dot(hh.astype(wm.dtype), wm,
                     preferred_element_type=jnp.float32) + bm
        return jnp.maximum(hh, 0.0)

    n_mid = layer_num - 2
    if n_mid <= _MID_UNROLL_MAX:
        for _ in range(n_mid):
            h = mid(h)
    else:
        h = lax.fori_loop(0, n_mid, lambda _, hh: mid(hh), h)

    # --- [bn3 + dropout3 + dense3] (folded) + clamp ---
    y = jnp.dot(h.astype(w3_ref.dtype), w3_ref[...],
                preferred_element_type=jnp.float32) + b3_ref[...]
    o_ref[...] = jnp.clip(y, -5.0, 5.0).astype(o_ref.dtype)


# ---------------------------------------------------------------------------
# Parameter preparation (weight_norm resolve, BN fold, padding, bf16 cast)
# ---------------------------------------------------------------------------
def _weight_norm(v, g):
    """PyTorch nn.utils.weight_norm: W = g * V / ||V||_row.

    v: (out, in), g: (out,). Returns W transposed to (in, out) for x @ W.
    """
    norm = jnp.sqrt(jnp.sum(v * v, axis=1, keepdims=True))
    norm = jnp.maximum(norm, 1e-12)  # guard all-zero rows from checkpoints
    w = g[:, None] * v / norm
    return w.T.astype(jnp.float32)


def _fold_bn_into_linear(gamma, beta, mean, var, w, b, eps=1e-5):
    """Fold eval-mode BatchNorm1d (applied before x @ w + b) into (w, b)."""
    scale = gamma / jnp.sqrt(var + eps)      # (in,)
    shift = beta - mean * scale              # (in,)
    w_f = w * scale[:, None]                 # scale rows of (in, out)
    b_f = b + shift @ w
    return w_f, b_f


def _pad2(a, rows, cols):
    out = jnp.zeros((rows, cols), a.dtype)
    return out.at[:a.shape[0], :a.shape[1]].set(a)


def make_raw_params(key, num_features, num_targets, hidden_size):
    """Raw parameters mirroring PyTorch's init (weight_norm v/g, bias, BN)."""
    ks = jax.random.split(key, 3)

    def make_linear(k, fan_in, fan_out):
        kv, kb = jax.random.split(k)
        bound = 1.0 / jnp.sqrt(fan_in)
        v = jax.random.uniform(kv, (fan_out, fan_in), jnp.float32, -bound, bound)
        g = jnp.sqrt(jnp.sum(v * v, axis=1))          # PyTorch: g = ||v||_row
        b = jax.random.uniform(kb, (fan_out,), jnp.float32, -bound, bound)
        return _weight_norm(v, g), b.astype(jnp.float32)

    def bn_init(dim):
        return (jnp.ones((dim,), jnp.float32),   # gamma
                jnp.zeros((dim,), jnp.float32),  # beta
                jnp.zeros((dim,), jnp.float32),  # running_mean
                jnp.ones((dim,), jnp.float32))   # running_var

    w1, b1 = make_linear(ks[0], num_features, hidden_size)
    wm, bm = make_linear(ks[1], hidden_size, hidden_size)
    w3, b3 = make_linear(ks[2], hidden_size, num_targets)

    return dict(w1=w1, b1=b1, wm=wm, bm=bm, w3=w3, b3=b3,
                bn1=bn_init(num_features), bnm=bn_init(hidden_size),
                bn3=bn_init(hidden_size))


def prepare_params(raw, num_features, num_targets, hidden_size):
    """Fold BN into the linears, pad hidden/target dims to 128, cast to bf16.

    The feature dim is deliberately left unpadded: full-dim blocks are legal
    and padding F -> 128 would inflate the input DMA (e.g. 8x for F=16) for
    zero MXU benefit.
    """
    hp = _round_up(hidden_size, 128)
    tp = _round_up(num_targets, 128)

    w1, b1 = _fold_bn_into_linear(*raw["bn1"], raw["w1"], raw["b1"])
    wm, bm = _fold_bn_into_linear(*raw["bnm"], raw["wm"], raw["bm"])
    w3, b3 = _fold_bn_into_linear(*raw["bn3"], raw["w3"], raw["b3"])

    return dict(
        w1=_pad2(w1, num_features, hp).astype(jnp.bfloat16),
        b1=_pad2(b1[None, :], 1, hp),
        wm=_pad2(wm, hp, hp).astype(jnp.bfloat16),
        bm=_pad2(bm[None, :], 1, hp),
        w3=_pad2(w3, hp, tp).astype(jnp.bfloat16),
        b3=_pad2(b3[None, :], 1, tp),
        num_features=num_features,
        num_targets=num_targets,
    )


# ---------------------------------------------------------------------------
# Wrapper
# ---------------------------------------------------------------------------
def _choose_batch_tile(batch, batch_tile):
    """Sublane-multiple batch tile, <= batch, with >=2 grid steps when the
    batch is large enough (v7x has 2 TensorCores sharding the parallel axis)."""
    if batch <= 8:
        return batch                          # single full-dim block
    tb = min(batch_tile, (batch // 8) * 8)    # multiple of 8, <= batch
    if batch <= tb and batch >= 16:
        tb = min((batch // 8) * 8, max(8, _round_up(-(-batch // 2), 8)))
    return tb


def nn_model_forward(x, params, layer_num, *, batch_tile=512):
    w1, b1 = params["w1"], params["b1"]
    wm, bm = params["wm"], params["bm"]
    w3, b3 = params["w3"], params["b3"]
    num_targets = params["num_targets"]

    batch, fdim = x.shape
    hp = w1.shape[1]
    tp = w3.shape[1]

    tb = _choose_batch_tile(batch, batch_tile)
    grid = (pl.cdiv(batch, tb),)              # ragged last block handled by Pallas

    # ---- VMEM budget: resident weights (single-buffered) + biases
    #      + double-buffered x/out tiles + activation working set.
    weight_bytes = int(w1.size + wm.size + w3.size) * 2          # bf16
    bias_bytes = int(b1.size + bm.size + b3.size) * 4            # f32
    io_bytes = 2 * tb * fdim * x.dtype.itemsize + 2 * tb * tp * 2
    act_bytes = 3 * tb * hp * 4
    vmem_limit = int(1.3 * (weight_bytes + bias_bytes + io_bytes + act_bytes)) + (2 << 20)
    vmem_limit = max(vmem_limit, 32 << 20)
    try:
        vmem_cap = int(pltpu.get_tpu_info().vmem_capacity_bytes)
    except Exception:
        vmem_cap = 64 << 20
    vmem_limit = min(vmem_limit, int(0.9 * vmem_cap), 64 << 20)

    # ---- Advisory cost estimate for XLA's scheduler.
    cost = pl.CostEstimate(
        flops=2 * batch * (fdim * hp + (layer_num - 2) * hp * hp + hp * tp),
        transcendentals=0,
        bytes_accessed=int(batch * fdim * x.dtype.itemsize
                           + weight_bytes + bias_bytes + batch * tp * 2),
    )

    def run(single_buffer_weights):
        # Constant index_maps -> weights stay VMEM-resident across the grid;
        # single-buffer them so the second (never-used) buffer isn't allocated.
        res = dict(pipeline_mode=pl.Buffered(1)) if single_buffer_weights else {}
        in_specs = [
            pl.BlockSpec((tb, fdim), lambda i: (i, 0)),          # x: tiled over batch
            pl.BlockSpec((fdim, hp), lambda i: (0, 0), **res),   # w1
            pl.BlockSpec((1, hp), lambda i: (0, 0), **res),      # b1
            pl.BlockSpec((hp, hp), lambda i: (0, 0), **res),     # wm
            pl.BlockSpec((1, hp), lambda i: (0, 0), **res),      # bm
            pl.BlockSpec((hp, tp), lambda i: (0, 0), **res),     # w3
            pl.BlockSpec((1, tp), lambda i: (0, 0), **res),      # b3
        ]
        return pl.pallas_call(
            functools.partial(_nnmodel_kernel, layer_num),
            out_shape=jax.ShapeDtypeStruct((batch, tp), jnp.bfloat16),
            grid=grid,
            in_specs=in_specs,
            out_specs=pl.BlockSpec((tb, tp), lambda i: (i, 0)),
            compiler_params=pltpu.CompilerParams(
                dimension_semantics=("parallel",),
                vmem_limit_bytes=vmem_limit),
            cost_estimate=cost,
        )(x, w1, b1, wm, bm, w3, b3)

    try:
        out = run(True)
    except Exception:
        # Installed JAX may not support single-buffered inputs; fall back to
        # the default double-buffered pipeline (correctness identical).
        out = run(False)

    # Lane-dense bf16 slab -> slice the real targets and restore f32 interface.
    return out[:batch, :num_targets].astype(jnp.float32)


# ---------------------------------------------------------------------------
# References
# ---------------------------------------------------------------------------
def reference_forward_f32(x, raw, layer_num, eps=1e-5):
    """Pure-JAX f32 reference mirroring the PyTorch eval-mode forward."""
    def bn(h, p):
        gamma, beta, mean, var = p
        return (h - mean) / jnp.sqrt(var + eps) * gamma + beta

    h = bn(x, raw["bn1"])
    h = jnp.maximum(h @ raw["w1"] + raw["b1"], 0.0)
    for _ in range(layer_num - 2):
        h = bn(h, raw["bnm"])
        h = jnp.maximum(h @ raw["wm"] + raw["bm"], 0.0)
    h = bn(h, raw["bn3"])
    y = h @ raw["w3"] + raw["b3"]
    return jnp.clip(y, -5.0, 5.0)


def reference_forward_folded(x, p, layer_num):
    """Reference using the same folded bf16 params the kernel uses."""
    h = jnp.dot(x.astype(jnp.bfloat16), p["w1"],
                preferred_element_type=jnp.float32) + p["b1"]
    h = jnp.maximum(h, 0.0)
    for _ in range(layer_num - 2):
        h = jnp.dot(h.astype(jnp.bfloat16), p["wm"],
                    preferred_element_type=jnp.float32) + p["bm"]
        h = jnp.maximum(h, 0.0)
    y = jnp.dot(h.astype(jnp.bfloat16), p["w3"],
                preferred_element_type=jnp.float32) + p["b3"]
    return jnp.clip(y, -5.0, 5.0)[:, :p["num_targets"]]


if __name__ == "__main__":
    # Small shapes consistent with the module's forward.
    batch = 8
    num_features = 16
    num_targets = 4
    hidden_size = 32
    layer_num = 4          # middle block repeats layer_num - 2 = 2 times
    # dropout_rate is irrelevant in eval mode (dropout == identity)

    key = jax.random.PRNGKey(0)
    kx, kp = jax.random.split(key)
    x = jax.random.normal(kx, (batch, num_features), jnp.float32)

    raw = make_raw_params(kp, num_features, num_targets, hidden_size)
    params = prepare_params(raw, num_features, num_targets, hidden_size)

    out = nn_model_forward(x, params, layer_num)
    out = jax.block_until_ready(out)
    assert out.shape == (batch, num_targets)
    assert out.dtype == jnp.float32

    # Check vs a reference using the same folded bf16 params (difference is
    # only MXU accumulation order + bf16 output rounding).
    ref_matched = reference_forward_folded(x, params, layer_num)
    assert jnp.allclose(out, ref_matched, atol=2e-2, rtol=2e-2), \
        "mismatch vs bf16-matched reference"

    # Looser check vs the exact PyTorch-semantics f32 reference
    # (difference is bf16 weight/activation/output rounding).
    ref_f32 = reference_forward_f32(x, raw, layer_num)
    assert jnp.allclose(out, ref_f32, atol=4e-2, rtol=4e-2), \
        "mismatch vs f32 reference"

    print("KERNEL_OK")
</pallas_src>

<mosaic_0001>
module attributes {stable_mosaic.version = 11 : i64} {
  func.func @_nnmodel_kernel(%arg0: i32, %arg1: memref<8x16xf32, #tpu.memory_space<vmem>>, %arg2: memref<16x128xbf16, #tpu.memory_space<vmem>>, %arg3: memref<1x128xf32, #tpu.memory_space<vmem>>, %arg4: memref<128x128xbf16, #tpu.memory_space<vmem>>, %arg5: memref<1x128xf32, #tpu.memory_space<vmem>>, %arg6: memref<128x128xbf16, #tpu.memory_space<vmem>>, %arg7: memref<1x128xf32, #tpu.memory_space<vmem>>, %arg8: memref<8x128xbf16, #tpu.memory_space<vmem>>) attributes {dimension_semantics = [#tpu.dimension_semantics<parallel>], iteration_bounds = array<i64: 1>, scalar_prefetch = 0 : i64, scratch_operands = 0 : i64, tpu.core_type = #tpu.core_type<tc>, window_params = [{transform_indices = @transform_0, window_bounds = array<i64: 8, 16>}, {pipeline_mode = #tpu.pipeline_mode<synchronous>, transform_indices = @transform_1, window_bounds = array<i64: 16, 128>}, {pipeline_mode = #tpu.pipeline_mode<synchronous>, transform_indices = @transform_2, window_bounds = array<i64: 1, 128>}, {pipeline_mode = #tpu.pipeline_mode<synchronous>, transform_indices = @transform_3, window_bounds = array<i64: 128, 128>}, {pipeline_mode = #tpu.pipeline_mode<synchronous>, transform_indices = @transform_4, window_bounds = array<i64: 1, 128>}, {pipeline_mode = #tpu.pipeline_mode<synchronous>, transform_indices = @transform_5, window_bounds = array<i64: 128, 128>}, {pipeline_mode = #tpu.pipeline_mode<synchronous>, transform_indices = @transform_6, window_bounds = array<i64: 1, 128>}, {transform_indices = @transform_7, window_bounds = array<i64: 8, 128>}]} {
    %c0 = arith.constant 0 : index
    %c0_0 = arith.constant 0 : index
    %0 = vector.load %arg1[%c0, %c0_0] : memref<8x16xf32, #tpu.memory_space<vmem>>, vector<8x16xf32>
    %1 = arith.truncf %0 : vector<8x16xf32> to vector<8x16xbf16>
    %c0_1 = arith.constant 0 : index
    %c0_2 = arith.constant 0 : index
    %2 = vector.load %arg2[%c0_1, %c0_2] : memref<16x128xbf16, #tpu.memory_space<vmem>>, vector<16x128xbf16>
    %cst = arith.constant dense<0.000000e+00> : vector<8x128xf32>
    %3 = tpu.matmul %1, %2, %cst {dimension_numbers = #tpu.dot_dimension_numbers<[1], [0], [0], [1], [0, 0, 1, 1], [], []>} : vector<8x16xbf16>, vector<16x128xbf16>, vector<8x128xf32> -> vector<8x128xf32>
    %c0_3 = arith.constant 0 : index
    %c0_4 = arith.constant 0 : index
    %4 = vector.load %arg3[%c0_3, %c0_4] : memref<1x128xf32, #tpu.memory_space<vmem>>, vector<1x128xf32>
    %5 = vector.broadcast %4 : vector<1x128xf32> to vector<8x128xf32>
    %6 = arith.addf %3, %5 : vector<8x128xf32>
    %cst_5 = arith.constant 0.000000e+00 : f32
    %7 = vector.broadcast %cst_5 : f32 to vector<8x128xf32>
    %8 = arith.maximumf %6, %7 : vector<8x128xf32>
    %c0_6 = arith.constant 0 : index
    %c0_7 = arith.constant 0 : index
    %9 = vector.load %arg4[%c0_6, %c0_7] : memref<128x128xbf16, #tpu.memory_space<vmem>>, vector<128x128xbf16>
    %c0_8 = arith.constant 0 : index
    %c0_9 = arith.constant 0 : index
    %10 = vector.load %arg5[%c0_8, %c0_9] : memref<1x128xf32, #tpu.memory_space<vmem>>, vector<1x128xf32>
    %11 = vector.shape_cast %10 : vector<1x128xf32> to vector<1x128xf32>
    %12 = vector.broadcast %11 : vector<1x128xf32> to vector<8x128xf32>
    %13 = arith.truncf %8 : vector<8x128xf32> to vector<8x128xbf16>
    %cst_10 = arith.constant dense<0.000000e+00> : vector<8x128xf32>
    %14 = tpu.matmul %13, %9, %cst_10 {dimension_numbers = #tpu.dot_dimension_numbers<[1], [0], [0], [1], [0, 0, 1, 1], [], []>} : vector<8x128xbf16>, vector<128x128xbf16>, vector<8x128xf32> -> vector<8x128xf32>
    %15 = arith.addf %14, %12 : vector<8x128xf32>
    %cst_11 = arith.constant 0.000000e+00 : f32
    %16 = vector.broadcast %cst_11 : f32 to vector<8x128xf32>
    %17 = arith.maximumf %15, %16 : vector<8x128xf32>
    %18 = arith.truncf %17 : vector<8x128xf32> to vector<8x128xbf16>
    %cst_12 = arith.constant dense<0.000000e+00> : vector<8x128xf32>
    %19 = tpu.matmul %18, %9, %cst_12 {dimension_numbers = #tpu.dot_dimension_numbers<[1], [0], [0], [1], [0, 0, 1, 1], [], []>} : vector<8x128xbf16>, vector<128x128xbf16>, vector<8x128xf32> -> vector<8x128xf32>
    %20 = arith.addf %19, %12 : vector<8x128xf32>
    %cst_13 = arith.constant 0.000000e+00 : f32
    %21 = vector.broadcast %cst_13 : f32 to vector<8x128xf32>
    %22 = arith.maximumf %20, %21 : vector<8x128xf32>
    %23 = arith.truncf %22 : vector<8x128xf32> to vector<8x128xbf16>
    %c0_14 = arith.constant 0 : index
    %c0_15 = arith.constant 0 : index
    %24 = vector.load %arg6[%c0_14, %c0_15] : memref<128x128xbf16, #tpu.memory_space<vmem>>, vector<128x128xbf16>
    %cst_16 = arith.constant dense<0.000000e+00> : vector<8x128xf32>
    %25 = tpu.matmul %23, %24, %cst_16 {dimension_numbers = #tpu.dot_dimension_numbers<[1], [0], [0], [1], [0, 0, 1, 1], [], []>} : vector<8x128xbf16>, vector<128x128xbf16>, vector<8x128xf32> -> vector<8x128xf32>
    %c0_17 = arith.constant 0 : index
    %c0_18 = arith.constant 0 : index
    %26 = vector.load %arg7[%c0_17, %c0_18] : memref<1x128xf32, #tpu.memory_space<vmem>>, vector<1x128xf32>
    %27 = vector.broadcast %26 : vector<1x128xf32> to vector<8x128xf32>
    %28 = arith.addf %25, %27 : vector<8x128xf32>
    %cst_19 = arith.constant -5.000000e+00 : f32
    %cst_20 = arith.constant 5.000000e+00 : f32
    %29 = vector.broadcast %cst_19 : f32 to vector<8x128xf32>
    %30 = arith.maximumf %29, %28 : vector<8x128xf32>
    %31 = vector.broadcast %cst_20 : f32 to vector<8x128xf32>
    %32 = arith.minimumf %31, %30 : vector<8x128xf32>
    %33 = arith.truncf %32 : vector<8x128xf32> to vector<8x128xbf16>
    %c0_21 = arith.constant 0 : index
    %c0_22 = arith.constant 0 : index
    %34 = vector.load %arg8[%c0_21, %c0_22] : memref<8x128xbf16, #tpu.memory_space<vmem>>, vector<8x128xbf16>
    tpu.vector_store %arg8[%c0_21, %c0_22], %33 {strides = array<i32>} : memref<8x128xbf16, #tpu.memory_space<vmem>>, vector<8x128xbf16>,
    return
  }
  func.func @transform_0(%arg0: i32) -> (i32, i32) {
    %c0_i32 = arith.constant 0 : i32
    %c0_i32_0 = arith.constant 0 : i32
    return %arg0, %c0_i32 : i32, i32
  }
  func.func @transform_1(%arg0: i32) -> (i32, i32) {
    %c0_i32 = arith.constant 0 : i32
    %c0_i32_0 = arith.constant 0 : i32
    %c0_i32_1 = arith.constant 0 : i32
    return %c0_i32, %c0_i32_0 : i32, i32
  }
  func.func @transform_2(%arg0: i32) -> (i32, i32) {
    %c0_i32 = arith.constant 0 : i32
    %c0_i32_0 = arith.constant 0 : i32
    %c0_i32_1 = arith.constant 0 : i32
    return %c0_i32, %c0_i32_0 : i32, i32
  }
  func.func @transform_3(%arg0: i32) -> (i32, i32) {
    %c0_i32 = arith.constant 0 : i32
    %c0_i32_0 = arith.constant 0 : i32
    %c0_i32_1 = arith.constant 0 : i32
    return %c0_i32, %c0_i32_0 : i32, i32
  }
  func.func @transform_4(%arg0: i32) -> (i32, i32) {
    %c0_i32 = arith.constant 0 : i32
    %c0_i32_0 = arith.constant 0 : i32
    %c0_i32_1 = arith.constant 0 : i32
    return %c0_i32, %c0_i32_0 : i32, i32
  }
  func.func @transform_5(%arg0: i32) -> (i32, i32) {
    %c0_i32 = arith.constant 0 : i32
    %c0_i32_0 = arith.constant 0 : i32
    %c0_i32_1 = arith.constant 0 : i32
    return %c0_i32, %c0_i32_0 : i32, i32
  }
  func.func @transform_6(%arg0: i32) -> (i32, i32) {
    %c0_i32 = arith.constant 0 : i32
    %c0_i32_0 = arith.constant 0 : i32
    %c0_i32_1 = arith.constant 0 : i32
    return %c0_i32, %c0_i32_0 : i32, i32
  }
  func.func @transform_7(%arg0: i32) -> (i32, i32) {
    %c0_i32 = arith.constant 0 : i32
    %c0_i32_0 = arith.constant 0 : i32
    return %arg0, %c0_i32 : i32, i32
  }
}

module attributes {stable_mosaic.version = 11 : i64} {
  func.func @_nnmodel_kernel(%arg0: i32, %arg1: memref<8x16xf32, #tpu.memory_space<vmem>>, %arg2: memref<16x128xbf16, #tpu.memory_space<vmem>>, %arg3: memref<1x128xf32, #tpu.memory_space<vmem>>, %arg4: memref<128x128xbf16, #tpu.memory_space<vmem>>, %arg5: memref<1x128xf32, #tpu.memory_space<vmem>>, %arg6: memref<128x128xbf16, #tpu.memory_space<vmem>>, %arg7: memref<1x128xf32, #tpu.memory_space<vmem>>, %arg8: memref<8x128xbf16, #tpu.memory_space<vmem>>) attributes {dimension_semantics = [#tpu.dimension_semantics<parallel>], iteration_bounds = array<i64: 1>, scalar_prefetch = 0 : i64, scratch_operands = 0 : i64, tpu.core_type = #tpu.core_type<tc>, window_params = [{transform_indices = @transform_0, window_bounds = array<i64: 8, 16>}, {pipeline_mode = #tpu.pipeline_mode<synchronous>, transform_indices = @transform_1, window_bounds = array<i64: 16, 128>}, {pipeline_mode = #tpu.pipeline_mode<synchronous>, transform_indices = @transform_2, window_bounds = array<i64: 1, 128>}, {pipeline_mode = #tpu.pipeline_mode<synchronous>, transform_indices = @transform_3, window_bounds = array<i64: 128, 128>}, {pipeline_mode = #tpu.pipeline_mode<synchronous>, transform_indices = @transform_4, window_bounds = array<i64: 1, 128>}, {pipeline_mode = #tpu.pipeline_mode<synchronous>, transform_indices = @transform_5, window_bounds = array<i64: 128, 128>}, {pipeline_mode = #tpu.pipeline_mode<synchronous>, transform_indices = @transform_6, window_bounds = array<i64: 1, 128>}, {transform_indices = @transform_7, window_bounds = array<i64: 8, 128>}]} {
    %c0 = arith.constant 0 : index
    %c0_0 = arith.constant 0 : index
    %0 = vector.load %arg1[%c0, %c0_0] : memref<8x16xf32, #tpu.memory_space<vmem>>, vector<8x16xf32>
    %1 = arith.truncf %0 : vector<8x16xf32> to vector<8x16xbf16>
    %c0_1 = arith.constant 0 : index
    %c0_2 = arith.constant 0 : index
    %2 = vector.load %arg2[%c0_1, %c0_2] : memref<16x128xbf16, #tpu.memory_space<vmem>>, vector<16x128xbf16>
    %cst = arith.constant dense<0.000000e+00> : vector<8x128xf32>
    %3 = tpu.matmul %1, %2, %cst {dimension_numbers = #tpu.dot_dimension_numbers<[1], [0], [0], [1], [0, 0, 1, 1], [], []>} : vector<8x16xbf16>, vector<16x128xbf16>, vector<8x128xf32> -> vector<8x128xf32>
    %c0_3 = arith.constant 0 : index
    %c0_4 = arith.constant 0 : index
    %4 = vector.load %arg3[%c0_3, %c0_4] : memref<1x128xf32, #tpu.memory_space<vmem>>, vector<1x128xf32>
    %5 = vector.broadcast %4 : vector<1x128xf32> to vector<8x128xf32>
    %6 = arith.addf %3, %5 : vector<8x128xf32>
    %cst_5 = arith.constant 0.000000e+00 : f32
    %7 = vector.broadcast %cst_5 : f32 to vector<8x128xf32>
    %8 = arith.maximumf %6, %7 : vector<8x128xf32>
    %c0_6 = arith.constant 0 : index
    %c0_7 = arith.constant 0 : index
    %9 = vector.load %arg4[%c0_6, %c0_7] : memref<128x128xbf16, #tpu.memory_space<vmem>>, vector<128x128xbf16>
    %c0_8 = arith.constant 0 : index
    %c0_9 = arith.constant 0 : index
    %10 = vector.load %arg5[%c0_8, %c0_9] : memref<1x128xf32, #tpu.memory_space<vmem>>, vector<1x128xf32>
    %11 = vector.shape_cast %10 : vector<1x128xf32> to vector<1x128xf32>
    %12 = vector.broadcast %11 : vector<1x128xf32> to vector<8x128xf32>
    %13 = arith.truncf %8 : vector<8x128xf32> to vector<8x128xbf16>
    %cst_10 = arith.constant dense<0.000000e+00> : vector<8x128xf32>
    %14 = tpu.matmul %13, %9, %cst_10 {dimension_numbers = #tpu.dot_dimension_numbers<[1], [0], [0], [1], [0, 0, 1, 1], [], []>} : vector<8x128xbf16>, vector<128x128xbf16>, vector<8x128xf32> -> vector<8x128xf32>
    %15 = arith.addf %14, %12 : vector<8x128xf32>
    %cst_11 = arith.constant 0.000000e+00 : f32
    %16 = vector.broadcast %cst_11 : f32 to vector<8x128xf32>
    %17 = arith.maximumf %15, %16 : vector<8x128xf32>
    %18 = arith.truncf %17 : vector<8x128xf32> to vector<8x128xbf16>
    %cst_12 = arith.constant dense<0.000000e+00> : vector<8x128xf32>
    %19 = tpu.matmul %18, %9, %cst_12 {dimension_numbers = #tpu.dot_dimension_numbers<[1], [0], [0], [1], [0, 0, 1, 1], [], []>} : vector<8x128xbf16>, vector<128x128xbf16>, vector<8x128xf32> -> vector<8x128xf32>
    %20 = arith.addf %19, %12 : vector<8x128xf32>
    %cst_13 = arith.constant 0.000000e+00 : f32
    %21 = vector.broadcast %cst_13 : f32 to vector<8x128xf32>
    %22 = arith.maximumf %20, %21 : vector<8x128xf32>
    %23 = arith.truncf %22 : vector<8x128xf32> to vector<8x128xbf16>
    %c0_14 = arith.constant 0 : index
    %c0_15 = arith.constant 0 : index
    %24 = vector.load %arg6[%c0_14, %c0_15] : memref<128x128xbf16, #tpu.memory_space<vmem>>, vector<128x128xbf16>
    %cst_16 = arith.constant dense<0.000000e+00> : vector<8x128xf32>
    %25 = tpu.matmul %23, %24, %cst_16 {dimension_numbers = #tpu.dot_dimension_numbers<[1], [0], [0], [1], [0, 0, 1, 1], [], []>} : vector<8x128xbf16>, vector<128x128xbf16>, vector<8x128xf32> -> vector<8x128xf32>
    %c0_17 = arith.constant 0 : index
    %c0_18 = arith.constant 0 : index
    %26 = vector.load %arg7[%c0_17, %c0_18] : memref<1x128xf32, #tpu.memory_space<vmem>>, vector<1x128xf32>
    %27 = vector.broadcast %26 : vector<1x128xf32> to vector<8x128xf32>
    %28 = arith.addf %25, %27 : vector<8x128xf32>
    %cst_19 = arith.constant -5.000000e+00 : f32
    %cst_20 = arith.constant 5.000000e+00 : f32
    %29 = vector.broadcast %cst_19 : f32 to vector<8x128xf32>
    %30 = arith.maximumf %29, %28 : vector<8x128xf32>
    %31 = vector.broadcast %cst_20 : f32 to vector<8x128xf32>
    %32 = arith.minimumf %31, %30 : vector<8x128xf32>
    %33 = arith.truncf %32 : vector<8x128xf32> to vector<8x128xbf16>
    %c0_21 = arith.constant 0 : index
    %c0_22 = arith.constant 0 : index
    %34 = vector.load %arg8[%c0_21, %c0_22] : memref<8x128xbf16, #tpu.memory_space<vmem>>, vector<8x128xbf16>
    tpu.vector_store %arg8[%c0_21, %c0_22], %33 {strides = array<i32>} : memref<8x128xbf16, #tpu.memory_space<vmem>>, vector<8x128xbf16>,
    return
  }
  func.func @transform_0(%arg0: i32) -> (i32, i32) {
    %c0_i32 = arith.constant 0 : i32
    %c0_i32_0 = arith.constant 0 : i32
    return %arg0, %c0_i32 : i32, i32
  }
  func.func @transform_1(%arg0: i32) -> (i32, i32) {
    %c0_i32 = arith.constant 0 : i32
    %c0_i32_0 = arith.constant 0 : i32
    %c0_i32_1 = arith.constant 0 : i32
    return %c0_i32, %c0_i32_0 : i32, i32
  }
  func.func @transform_2(%arg0: i32) -> (i32, i32) {
    %c0_i32 = arith.constant 0 : i32
    %c0_i32_0 = arith.constant 0 : i32
    %c0_i32_1 = arith.constant 0 : i32
    return %c0_i32, %c0_i32_0 : i32, i32
  }
  func.func @transform_3(%arg0: i32) -> (i32, i32) {
    %c0_i32 = arith.constant 0 : i32
    %c0_i32_0 = arith.constant 0 : i32
    %c0_i32_1 = arith.constant 0 : i32
    return %c0_i32, %c0_i32_0 : i32, i32
  }
  func.func @transform_4(%arg0: i32) -> (i32, i32) {
    %c0_i32 = arith.constant 0 : i32
    %c0_i32_0 = arith.constant 0 : i32
    %c0_i32_1 = arith.constant 0 : i32
    return %c0_i32, %c0_i32_0 : i32, i32
  }
  func.func @transform_5(%arg0: i32) -> (i32, i32) {
    %c0_i32 = arith.constant 0 : i32
    %c0_i32_0 = arith.constant 0 : i32
    %c0_i32_1 = arith.constant 0 : i32
    return %c0_i32, %c0_i32_0 : i32, i32
  }
  func.func @transform_6(%arg0: i32) -> (i32, i32) {
    %c0_i32 = arith.constant 0 : i32
    %c0_i32_0 = arith.constant 0 : i32
    %c0_i32_1 = arith.constant 0 : i32
    return %c0_i32, %c0_i32_0 : i32, i32
  }
  func.func @transform_7(%arg0: i32) -> (i32, i32) {
    %c0_i32 = arith.constant 0 : i32
    %c0_i32_0 = arith.constant 0 : i32
    return %arg0, %c0_i32 : i32, i32
  }
}

</mosaic_0001>

<bundles_post_ra>
// kernel: tpu_custom_call.1
= control target key start
LH: loop header
LB: loop body
LE: loop exit
PB: predicated region body
PF: predicated region fallthrough
CT: control target
= control target key end

     0   :  { %12 = vsyncpa [#allocation3], 0  ;;  %s797_s0 = inlined_call_operand.hbm [shape: f32[8,16], index: 0, kind: input, shape index: {}]   ;;  %s798_s1 = inlined_call_operand.hbm [shape: bf16[16,128], index: 1, kind: input, shape index: {}]   ;;  %s799_s2 = inlined_call_operand.vmem [shape: f32[1,128], index: 2, kind: input, shape index: {}]   ;;  %s800_s3 = inlined_call_operand.hbm [shape: bf16[128,128], index: 3, kind: input, shape index: {}]   ;;  %s801_s4 = inlined_call_operand.vmem [shape: f32[1,128], index: 4, kind: input, shape index: {}]   ;;  %s802_s5 = inlined_call_operand.hbm [shape: bf16[128,128], index: 5, kind: input, shape index: {}]   ;;  %s803_s6 = inlined_call_operand.vmem [shape: f32[1,128], index: 6, kind: input, shape index: {}]   ;;  %s804_s7 = inlined_call_operand.hbm [shape: bf16[8,128], index: 7, kind: output, shape index: {}]  }
   0x1   :  { %13 = vsyncpa [#allocation6], 0 }
   0x2   :  { %14 = vsyncpa [#allocation9], 0 }
   0x3   :  { %15 = vsyncpa [#allocation4], 0  ;;  %s682_s24 = smov [#allocation5]  }
   0x4   :  { %s31_s25 = sshll.u32 %s682_s24, 4  ;;  %s32_s25 = int_to_ptr.vmem [resolvable:$true] %s31_s25 }
   0x5   :  { %s582_s26 = scalar_lea.vmem %s32_s25, 128  ;;  %p587_p1 = scmp.lt.s32.totalorder %s32_s25, %s32_s25 }
   0x6   :  { %p583_p0 = scmp.ne.s32.totalorder %s32_s25, %s582_s26  ;;  %p588_p2 = scmp.lt.s32.totalorder %s582_s26, %s582_s26 }
   0x8   :  { %p589_p3 = por %p588_p2, %p587_p1 }
   0xa   :  { %p590_p4 = pnand %p589_p3, %p583_p0 }
   0xc   :  { %593 = shalt.err (!%p590_p4)
}
   0xd   :  { %s683_s27 = smov 64   ;;  %s684_s28 = smov 4  }
   0xe   :  { %37 = dma.hbm_to_vmem [thread:$0]  %s798_s1, 128, %s32_s25, [#allocation6], %s683_s27, %s683_s27, %s684_s28  }
   0xf   :  { %s685_s8 = smov [#allocation2]   ;;  %s686_s10 = smov [#allocation7]  }
  0x10   :  { %s22_s9 = sshll.u32 %s685_s8, 4  ;;  %s45_s11 = sshll.u32 %s686_s10, 4  ;;  %s23_s9 = int_to_ptr.vmem [resolvable:$true] %s22_s9  ;;  %s46_s11 = int_to_ptr.vmem [resolvable:$true] %s45_s11 }
  0x11   :  { %s602_s12 = scalar_lea.vmem %s23_s9, 128  ;;  %p607_p6 = scmp.lt.s32.totalorder %s23_s9, %s23_s9 }
  0x12   :  { %p603_p5 = scmp.ne.s32.totalorder %s23_s9, %s602_s12  ;;  %p608_p7 = scmp.lt.s32.totalorder %s602_s12, %s602_s12 }
  0x14   :  { %p609_p8 = por %p608_p7, %p607_p6 }
  0x16   :  { %p610_p9 = pnand %p609_p8, %p603_p5 }
  0x18   :  { %613 = shalt.err (!%p610_p9)
}
  0x19   :  { %25 = dma.hbm_to_vmem [thread:$0]  %s797_s0, 128, %s23_s9, [#allocation3]  }
  0x1a   :  { %s622_s15 = scalar_lea.vmem %s46_s11, 1024  ;;  %p627_p11 = scmp.lt.s32.totalorder %s46_s11, %s46_s11 }
  0x1b   :  { %p623_p10 = scmp.ne.s32.totalorder %s46_s11, %s622_s15  ;;  %p628_p12 = scmp.lt.s32.totalorder %s622_s15, %s622_s15 }
  0x1d   :  { %p629_p13 = por %p628_p12, %p627_p11 }
  0x1f   :  { %p630_p0 = pnand %p629_p13, %p623_p10 }
  0x21   :  { %633 = shalt.err (!%p630_p0)
}
  0x22   :  { %51 = dma.hbm_to_vmem [thread:$0]  %s800_s3, 1024, %s46_s11, [#allocation6], %s683_s27, %s683_s27, %s684_s28  }
  0x23   :  { %s687_s17 = smov [#allocation8]  }
  0x24   :  { %s59_s18 = sshll.u32 %s687_s17, 4  ;;  %s60_s18 = int_to_ptr.vmem [resolvable:$true] %s59_s18 }
  0x25   :  { %s642_s19 = scalar_lea.vmem %s60_s18, 1024  ;;  %p647_p2 = scmp.lt.s32.totalorder %s60_s18, %s60_s18 }
  0x26   :  { %p643_p1 = scmp.ne.s32.totalorder %s60_s18, %s642_s19  ;;  %p648_p3 = scmp.lt.s32.totalorder %s642_s19, %s642_s19 }
  0x28   :  { %p649_p4 = por %p648_p3, %p647_p2 }
  0x2a   :  { %p650_p5 = pnand %p649_p4, %p643_p1 }
  0x2c   :  { %653 = shalt.err (!%p650_p5)
}
  0x2d   :  { %65 = dma.hbm_to_vmem [thread:$0]  %s802_s5, 1024, %s60_s18, [#allocation9], %s683_s27, %s683_s27, %s684_s28  }
  0x2e   :  { %674 = dma.done.wait [#allocation3], 128  }
  0x2f   :  { %675 = vsyncadd [#allocation3], 4294967168 }
  0x30   :  { %676 = dma.done.wait [#allocation6], 1152  }
  0x31   :  { %677 = vsyncadd [#allocation6], 4294966144 }
  0x32   :  { %678 = dma.done.wait [#allocation9], 1024  }
  0x33   :  { %679 = vsyncadd [#allocation9], 4294966272  ;;  %v688_v0 = vmov 0.0   ;;  %vm689_vm0 = vmmov 0   ;;  %v557_v1 = vld [vmem:[#allocation5] sm:$0xff]   ;;  %v81_v2 = vld [vmem:[#allocation2] sm:$0xff] }
  0x34   :  { %482 = vmatprep.subr.bf16.mxu0 %v688_v0  ;;  %484 = vmatprep.mubr.msk.bf16.mxu0 %vm689_vm0, %v688_v0  ;;  %v82_v3 = vpack.c.bf16 %v81_v2, %v81_v2  ;;  %vm98_vm1 = vcmask 130048   ;;  %v558_v4 = vld [vmem:[#allocation7 + $0x38] sm:$0xff]   ;;  %v559_v5 = vld [vmem:[#allocation7 + $0x30] sm:$0xff]   ;;  %v560_v6 = vld [vmem:[#allocation7 + $0x28] sm:$0xff]   ;;  %s690_s23 = smov [#allocation10]  }
  0x35   :  { %488 = vmatprep.subr.bf16.mxu1 %v688_v0  ;;  %504 = vmatprep.mubr.msk.bf16.mxu1 %vm689_vm0, %v688_v0  ;;  %v561_v7 = vld [vmem:[#allocation7 + $0x20] sm:$0xff]   ;;  %v562_v8 = vld [vmem:[#allocation7 + $0x18] sm:$0xff]   ;;  %v563_v9 = vld [vmem:[#allocation7 + $0x10] sm:$0xff]   ;;  %s420_s24 = sshll.u32 %s690_s23, 4  ;;  %s421_s24 = int_to_ptr.vmem [resolvable:$true] %s420_s24 }
  0x36   :  { %483 = vmatpush3.bf16.msra.mxu0 %v557_v1  ;;  %489 = vmatpush3.bf16.msra.mxu1 %v558_v4  ;;  %v564_v10 = vld [vmem:[#allocation7 + $0x8] sm:$0xff]   ;;  %v565_v11 = vld [vmem:[#allocation7] sm:$0xff]   ;;  %v431_v12 = vld [vmem:[%s799_s2] ss:$0 sm:$0xff]  ;;  %s654_s25 = scalar_lea.vmem %s421_s24, 64  ;;  %p659_p7 = scmp.lt.s32.totalorder %s421_s24, %s421_s24 }
  0x37   :  { %508 = vmatprep.subr.bf16.mxu0 %v688_v0  ;;  %490 = vmatprep.subr.bf16.mxu1 %v688_v0  ;;  %v566_v20 = vld [vmem:[#allocation8 + $0x38] sm:$0xff]   ;;  %v567_v21 = vld [vmem:[#allocation8 + $0x30] sm:$0xff]   ;;  %v568_v22 = vld [vmem:[#allocation8 + $0x28] sm:$0xff]   ;;  %p655_p6 = scmp.ne.s32.totalorder %s421_s24, %s654_s25  ;;  %p660_p8 = scmp.lt.s32.totalorder %s654_s25, %s654_s25 }
  0x38   :  { %v569_v23 = vld [vmem:[#allocation8 + $0x20] sm:$0xff]   ;;  %v570_v24 = vld [vmem:[#allocation8 + $0x18] sm:$0xff]   ;;  %v571_v25 = vld [vmem:[#allocation8 + $0x10] sm:$0xff]  }
  0x39   :  { %485 = vmatmul.mubr.msk.bf16.vlgmr.msra.gmra.mxu0 %vm98_vm1, %v82_v3  ;;  %v434_v26 = vld [vmem:[%s801_s4] ss:$0 sm:$0xff]  ;;  %v572_v34 = vld [vmem:[#allocation8 + $0x8] sm:$0xff]   ;;  %v573_v35 = vld [vmem:[#allocation8] sm:$0xff]   ;;  %p661_p9 = por %p660_p8, %p659_p7 }
  0x3a   :  { %509 = vmatpush3.bf16.msra.mxu0 %v558_v4  ;;  %524 = vmatprep.mubr.msk.bf16.mxu0 %vm689_vm0, %v688_v0  ;;  %v443_v43 = vld [vmem:[%s803_s6] ss:$0 sm:$0xff] }
  0x3b   :  { %510 = vmatprep.subr.bf16.mxu0 %v688_v0  ;;  %491 = vmatpush3.bf16.msra.mxu1 %v559_v5  ;;  %p662_p10 = pnand %p661_p9, %p655_p6 }
  0x3c   :  { %492 = vmatprep.subr.bf16.mxu1 %v688_v0 }
  0x3e   :  { %511 = vmatpush3.bf16.msra.mxu0 %v559_v5 }
  0x3f   :  { %512 = vmatprep.subr.bf16.mxu0 %v688_v0  ;;  %493 = vmatpush3.bf16.msra.mxu1 %v560_v6 }
  0x40   :  { %494 = vmatprep.subr.bf16.mxu1 %v688_v0 }
  0x42   :  { %513 = vmatpush3.bf16.msra.mxu0 %v560_v6 }
  0x43   :  { %514 = vmatprep.subr.bf16.mxu0 %v688_v0  ;;  %495 = vmatpush3.bf16.msra.mxu1 %v561_v7 }
  0x44   :  { %496 = vmatprep.subr.bf16.mxu1 %v688_v0 }
  0x46   :  { %515 = vmatpush3.bf16.msra.mxu0 %v561_v7 }
  0x47   :  { %516 = vmatprep.subr.bf16.mxu0 %v688_v0  ;;  %497 = vmatpush3.bf16.msra.mxu1 %v562_v8 }
  0x48   :  { %498 = vmatprep.subr.bf16.mxu1 %v688_v0 }
  0x4a   :  { %517 = vmatpush3.bf16.msra.mxu0 %v562_v8 }
  0x4b   :  { %518 = vmatprep.subr.bf16.mxu0 %v688_v0  ;;  %499 = vmatpush3.bf16.msra.mxu1 %v563_v9 }
  0x4c   :  { %500 = vmatprep.subr.bf16.mxu1 %v688_v0 }
  0x4e   :  { %519 = vmatpush3.bf16.msra.mxu0 %v563_v9 }
  0x4f   :  { %520 = vmatprep.subr.bf16.mxu0 %v688_v0  ;;  %501 = vmatpush3.bf16.msra.mxu1 %v564_v10 }
  0x50   :  { %502 = vmatprep.subr.bf16.mxu1 %v688_v0 }
  0x52   :  { %521 = vmatpush3.bf16.msra.mxu0 %v564_v10 }
  0x53   :  { %522 = vmatprep.subr.bf16.mxu0 %v688_v0  ;;  %503 = vmatpush3.bf16.msra.mxu1 %v565_v11 }
  0x54   :  { %528 = vmatprep.subr.bf16.mxu1 %v688_v0 }
  0x56   :  { %523 = vmatpush3.bf16.msra.mxu0 %v565_v11 }
  0xf9   :  { %v136_v13 = vpop.f32.mrf.mxu0 }
  0xfa   :  { %v137_v14 = vadd.f32 %v431_v12, %v136_v13 }
  0xfb   :  { %v486_v15 = vpop.f32.mrf.mxu0 }
  0xfc   :  { %v142_v16 = vmax.f32 %v137_v14, 0.0 }
  0xfd   :  { %v139_v17 = vpop.f32.mrf.mxu0 }
  0xfe   :  { %v166_v18 = vpack.c.bf16 %v142_v16, %v142_v16 }
  0xff   :  { %v487_v19 = vpop.f32.mrf.mxu0 }
 0x100   :  { %505 = vmatmul.mubr.bf16.vlgmr.msra.gmra.mxu1 %v166_v18 }
 0x101   :  { %544 = vmatprep.mubr.msk.bf16.mxu1 %vm689_vm0, %v688_v0  ;;  %529 = vmatpush3.bf16.msra.mxu1 %v566_v20 }
 0x102   :  { %530 = vmatprep.subr.bf16.mxu1 %v688_v0 }
 0x105   :  { %531 = vmatpush3.bf16.msra.mxu1 %v567_v21 }
 0x106   :  { %532 = vmatprep.subr.bf16.mxu1 %v688_v0 }
 0x109   :  { %533 = vmatpush3.bf16.msra.mxu1 %v568_v22 }
 0x10a   :  { %534 = vmatprep.subr.bf16.mxu1 %v688_v0 }
 0x10d   :  { %535 = vmatpush3.bf16.msra.mxu1 %v569_v23 }
 0x10e   :  { %536 = vmatprep.subr.bf16.mxu1 %v688_v0 }
 0x111   :  { %537 = vmatpush3.bf16.msra.mxu1 %v570_v24 }
 0x112   :  { %538 = vmatprep.subr.bf16.mxu1 %v688_v0 }
 0x115   :  { %539 = vmatpush3.bf16.msra.mxu1 %v571_v25 }
 0x116   :  { %540 = vmatprep.subr.bf16.mxu1 %v688_v0 }
 0x119   :  { %541 = vmatpush3.bf16.msra.mxu1 %v572_v34 }
 0x11a   :  { %542 = vmatprep.subr.bf16.mxu1 %v688_v0 }
 0x11d   :  { %543 = vmatpush3.bf16.msra.mxu1 %v573_v35 }
 0x1c0   :  { %v249_v27 = vpop.f32.mrf.mxu1 }
 0x1c1   :  { %v250_v28 = vadd.f32 %v434_v26, %v249_v27 }
 0x1c2   :  { %v506_v29 = vpop.f32.mrf.mxu1 }
 0x1c3   :  { %v255_v30 = vmax.f32 %v250_v28, 0.0 }
 0x1c4   :  { %v252_v31 = vpop.f32.mrf.mxu1 }
 0x1c5   :  { %v256_v32 = vpack.c.bf16 %v255_v30, %v255_v30 }
 0x1c6   :  { %v507_v33 = vpop.f32.mrf.mxu1 }
 0x1c7   :  { %525 = vmatmul.mubr.bf16.vlgmr.msra.gmra.mxu0 %v256_v32 }
 0x287   :  { %v291_v36 = vpop.f32.mrf.mxu0 }
 0x288   :  { %v292_v37 = vadd.f32 %v434_v26, %v291_v36 }
 0x289   :  { %v526_v38 = vpop.f32.mrf.mxu0 }
 0x28a   :  { %v297_v39 = vmax.f32 %v292_v37, 0.0 }
 0x28b   :  { %v294_v40 = vpop.f32.mrf.mxu0 }
 0x28c   :  { %v298_v41 = vpack.c.bf16 %v297_v39, %v297_v39 }
 0x28d   :  { %v527_v42 = vpop.f32.mrf.mxu0 }
 0x28e   :  { %545 = vmatmul.mubr.bf16.vlgmr.msra.gmra.mxu1 %v298_v41 }
 0x34e   :  { %v404_v44 = vpop.f32.mrf.mxu1 }
 0x34f   :  { %v405_v45 = vadd.f32 %v443_v43, %v404_v44 }
 0x350   :  { %v546_v46 = vpop.f32.mrf.mxu1 }
 0x351   :  { %v452_v47 = vclamps-f32 %v405_v45, 5.0 }
 0x352   :  { %v407_v48 = vpop.f32.mrf.mxu1 }
 0x353   :  { %v412_v49 = vpack.c.bf16 %v452_v47, %v452_v47 }
 0x354   :  { %v547_v50 = vpop.f32.mrf.mxu1 }
 0x355   :  { %413 = vst [vmem:[#allocation10] sm:$0xf] %v412_v49 }
 0x356   :  { %665 = shalt.err (!%p662_p10)
}
 0x357   :  { %423 = dma.vmem_to_hbm [thread:$0]  %s421_s24, 64, %s804_s7, [#allocation4]  }
 0x358   :  { %680 = dma.done.wait [#allocation4], 64  }
 0x359   :  { %681 = vsyncadd [#allocation4], 4294967232 }
 0x35a   :  { %427 = vsyncpa [#allocation3], 1 }
 0x35b   :  { %428 = vsyncpa [#allocation6], 1 }
 0x35c   :  { %429 = vsyncpa [#allocation9], 1 }
 0x35d   :  { %430 = vsyncpa [#allocation4], 1 }

// kernel: tpu_custom_call.1
= control target key start
LH: loop header
LB: loop body
LE: loop exit
PB: predicated region body
PF: predicated region fallthrough
CT: control target
= control target key end

     0   :  { %12 = vsyncpa [#allocation3], 0  ;;  %s797_s0 = inlined_call_operand.hbm [shape: f32[8,16], index: 0, kind: input, shape index: {}]   ;;  %s798_s1 = inlined_call_operand.hbm [shape: bf16[16,128], index: 1, kind: input, shape index: {}]   ;;  %s799_s2 = inlined_call_operand.vmem [shape: f32[1,128], index: 2, kind: input, shape index: {}]   ;;  %s800_s3 = inlined_call_operand.hbm [shape: bf16[128,128], index: 3, kind: input, shape index: {}]   ;;  %s801_s4 = inlined_call_operand.vmem [shape: f32[1,128], index: 4, kind: input, shape index: {}]   ;;  %s802_s5 = inlined_call_operand.hbm [shape: bf16[128,128], index: 5, kind: input, shape index: {}]   ;;  %s803_s6 = inlined_call_operand.vmem [shape: f32[1,128], index: 6, kind: input, shape index: {}]   ;;  %s804_s7 = inlined_call_operand.hbm [shape: bf16[8,128], index: 7, kind: output, shape index: {}]  }
   0x1   :  { %13 = vsyncpa [#allocation6], 0 }
   0x2   :  { %14 = vsyncpa [#allocation9], 0 }
   0x3   :  { %15 = vsyncpa [#allocation4], 0  ;;  %s682_s24 = smov [#allocation5]  }
   0x4   :  { %s31_s25 = sshll.u32 %s682_s24, 4  ;;  %s32_s25 = int_to_ptr.vmem [resolvable:$true] %s31_s25 }
   0x5   :  { %s582_s26 = scalar_lea.vmem %s32_s25, 128  ;;  %p587_p1 = scmp.lt.s32.totalorder %s32_s25, %s32_s25 }
   0x6   :  { %p583_p0 = scmp.ne.s32.totalorder %s32_s25, %s582_s26  ;;  %p588_p2 = scmp.lt.s32.totalorder %s582_s26, %s582_s26 }
   0x8   :  { %p589_p3 = por %p588_p2, %p587_p1 }
   0xa   :  { %p590_p4 = pnand %p589_p3, %p583_p0 }
   0xc   :  { %593 = shalt.err (!%p590_p4)
}
   0xd   :  { %s683_s27 = smov 64   ;;  %s684_s28 = smov 4  }
   0xe   :  { %37 = dma.hbm_to_vmem [thread:$0]  %s798_s1, 128, %s32_s25, [#allocation6], %s683_s27, %s683_s27, %s684_s28  }
   0xf   :  { %s685_s8 = smov [#allocation2]   ;;  %s686_s10 = smov [#allocation7]  }
  0x10   :  { %s22_s9 = sshll.u32 %s685_s8, 4  ;;  %s45_s11 = sshll.u32 %s686_s10, 4  ;;  %s23_s9 = int_to_ptr.vmem [resolvable:$true] %s22_s9  ;;  %s46_s11 = int_to_ptr.vmem [resolvable:$true] %s45_s11 }
  0x11   :  { %s602_s12 = scalar_lea.vmem %s23_s9, 128  ;;  %p607_p6 = scmp.lt.s32.totalorder %s23_s9, %s23_s9 }
  0x12   :  { %p603_p5 = scmp.ne.s32.totalorder %s23_s9, %s602_s12  ;;  %p608_p7 = scmp.lt.s32.totalorder %s602_s12, %s602_s12 }
  0x14   :  { %p609_p8 = por %p608_p7, %p607_p6 }
  0x16   :  { %p610_p9 = pnand %p609_p8, %p603_p5 }
  0x18   :  { %613 = shalt.err (!%p610_p9)
}
  0x19   :  { %25 = dma.hbm_to_vmem [thread:$0]  %s797_s0, 128, %s23_s9, [#allocation3]  }
  0x1a   :  { %s622_s15 = scalar_lea.vmem %s46_s11, 1024  ;;  %p627_p11 = scmp.lt.s32.totalorder %s46_s11, %s46_s11 }
  0x1b   :  { %p623_p10 = scmp.ne.s32.totalorder %s46_s11, %s622_s15  ;;  %p628_p12 = scmp.lt.s32.totalorder %s622_s15, %s622_s15 }
  0x1d   :  { %p629_p13 = por %p628_p12, %p627_p11 }
  0x1f   :  { %p630_p0 = pnand %p629_p13, %p623_p10 }
  0x21   :  { %633 = shalt.err (!%p630_p0)
}
  0x22   :  { %51 = dma.hbm_to_vmem [thread:$0]  %s800_s3, 1024, %s46_s11, [#allocation6], %s683_s27, %s683_s27, %s684_s28  }
  0x23   :  { %s687_s17 = smov [#allocation8]  }
  0x24   :  { %s59_s18 = sshll.u32 %s687_s17, 4  ;;  %s60_s18 = int_to_ptr.vmem [resolvable:$true] %s59_s18 }
  0x25   :  { %s642_s19 = scalar_lea.vmem %s60_s18, 1024  ;;  %p647_p2 = scmp.lt.s32.totalorder %s60_s18, %s60_s18 }
  0x26   :  { %p643_p1 = scmp.ne.s32.totalorder %s60_s18, %s642_s19  ;;  %p648_p3 = scmp.lt.s32.totalorder %s642_s19, %s642_s19 }
  0x28   :  { %p649_p4 = por %p648_p3, %p647_p2 }
  0x2a   :  { %p650_p5 = pnand %p649_p4, %p643_p1 }
  0x2c   :  { %653 = shalt.err (!%p650_p5)
}
  0x2d   :  { %65 = dma.hbm_to_vmem [thread:$0]  %s802_s5, 1024, %s60_s18, [#allocation9], %s683_s27, %s683_s27, %s684_s28  }
  0x2e   :  { %674 = dma.done.wait [#allocation3], 128  }
  0x2f   :  { %675 = vsyncadd [#allocation3], 4294967168 }
  0x30   :  { %676 = dma.done.wait [#allocation6], 1152  }
  0x31   :  { %677 = vsyncadd [#allocation6], 4294966144 }
  0x32   :  { %678 = dma.done.wait [#allocation9], 1024  }
  0x33   :  { %679 = vsyncadd [#allocation9], 4294966272  ;;  %v688_v0 = vmov 0.0   ;;  %vm689_vm0 = vmmov 0   ;;  %v557_v1 = vld [vmem:[#allocation5] sm:$0xff]   ;;  %v81_v2 = vld [vmem:[#allocation2] sm:$0xff] }
  0x34   :  { %482 = vmatprep.subr.bf16.mxu0 %v688_v0  ;;  %484 = vmatprep.mubr.msk.bf16.mxu0 %vm689_vm0, %v688_v0  ;;  %v82_v3 = vpack.c.bf16 %v81_v2, %v81_v2  ;;  %vm98_vm1 = vcmask 130048   ;;  %v558_v4 = vld [vmem:[#allocation7 + $0x38] sm:$0xff]   ;;  %v559_v5 = vld [vmem:[#allocation7 + $0x30] sm:$0xff]   ;;  %v560_v6 = vld [vmem:[#allocation7 + $0x28] sm:$0xff]   ;;  %s690_s23 = smov [#allocation10]  }
  0x35   :  { %488 = vmatprep.subr.bf16.mxu1 %v688_v0  ;;  %504 = vmatprep.mubr.msk.bf16.mxu1 %vm689_vm0, %v688_v0  ;;  %v561_v7 = vld [vmem:[#allocation7 + $0x20] sm:$0xff]   ;;  %v562_v8 = vld [vmem:[#allocation7 + $0x18] sm:$0xff]   ;;  %v563_v9 = vld [vmem:[#allocation7 + $0x10] sm:$0xff]   ;;  %s420_s24 = sshll.u32 %s690_s23, 4  ;;  %s421_s24 = int_to_ptr.vmem [resolvable:$true] %s420_s24 }
  0x36   :  { %483 = vmatpush3.bf16.msra.mxu0 %v557_v1  ;;  %489 = vmatpush3.bf16.msra.mxu1 %v558_v4  ;;  %v564_v10 = vld [vmem:[#allocation7 + $0x8] sm:$0xff]   ;;  %v565_v11 = vld [vmem:[#allocation7] sm:$0xff]   ;;  %v431_v12 = vld [vmem:[%s799_s2] ss:$0 sm:$0xff]  ;;  %s654_s25 = scalar_lea.vmem %s421_s24, 64  ;;  %p659_p7 = scmp.lt.s32.totalorder %s421_s24, %s421_s24 }
  0x37   :  { %508 = vmatprep.subr.bf16.mxu0 %v688_v0  ;;  %490 = vmatprep.subr.bf16.mxu1 %v688_v0  ;;  %v566_v20 = vld [vmem:[#allocation8 + $0x38] sm:$0xff]   ;;  %v567_v21 = vld [vmem:[#allocation8 + $0x30] sm:$0xff]   ;;  %v568_v22 = vld [vmem:[#allocation8 + $0x28] sm:$0xff]   ;;  %p655_p6 = scmp.ne.s32.totalorder %s421_s24, %s654_s25  ;;  %p660_p8 = scmp.lt.s32.totalorder %s654_s25, %s654_s25 }
  0x38   :  { %v569_v23 = vld [vmem:[#allocation8 + $0x20] sm:$0xff]   ;;  %v570_v24 = vld [vmem:[#allocation8 + $0x18] sm:$0xff]   ;;  %v571_v25 = vld [vmem:[#allocation8 + $0x10] sm:$0xff]  }
  0x39   :  { %485 = vmatmul.mubr.msk.bf16.vlgmr.msra.gmra.mxu0 %vm98_vm1, %v82_v3  ;;  %v434_v26 = vld [vmem:[%s801_s4] ss:$0 sm:$0xff]  ;;  %v572_v34 = vld [vmem:[#allocation8 + $0x8] sm:$0xff]   ;;  %v573_v35 = vld [vmem:[#allocation8] sm:$0xff]   ;;  %p661_p9 = por %p660_p8, %p659_p7 }
  0x3a   :  { %509 = vmatpush3.bf16.msra.mxu0 %v558_v4  ;;  %524 = vmatprep.mubr.msk.bf16.mxu0 %vm689_vm0, %v688_v0  ;;  %v443_v43 = vld [vmem:[%s803_s6] ss:$0 sm:$0xff] }
  0x3b   :  { %510 = vmatprep.subr.bf16.mxu0 %v688_v0  ;;  %491 = vmatpush3.bf16.msra.mxu1 %v559_v5  ;;  %p662_p10 = pnand %p661_p9, %p655_p6 }
  0x3c   :  { %492 = vmatprep.subr.bf16.mxu1 %v688_v0 }
  0x3e   :  { %511 = vmatpush3.bf16.msra.mxu0 %v559_v5 }
  0x3f   :  { %512 = vmatprep.subr.bf16.mxu0 %v688_v0  ;;  %493 = vmatpush3.bf16.msra.mxu1 %v560_v6 }
  0x40   :  { %494 = vmatprep.subr.bf16.mxu1 %v688_v0 }
  0x42   :  { %513 = vmatpush3.bf16.msra.mxu0 %v560_v6 }
  0x43   :  { %514 = vmatprep.subr.bf16.mxu0 %v688_v0  ;;  %495 = vmatpush3.bf16.msra.mxu1 %v561_v7 }
  0x44   :  { %496 = vmatprep.subr.bf16.mxu1 %v688_v0 }
  0x46   :  { %515 = vmatpush3.bf16.msra.mxu0 %v561_v7 }
  0x47   :  { %516 = vmatprep.subr.bf16.mxu0 %v688_v0  ;;  %497 = vmatpush3.bf16.msra.mxu1 %v562_v8 }
  0x48   :  { %498 = vmatprep.subr.bf16.mxu1 %v688_v0 }
  0x4a   :  { %517 = vmatpush3.bf16.msra.mxu0 %v562_v8 }
  0x4b   :  { %518 = vmatprep.subr.bf16.mxu0 %v688_v0  ;;  %499 = vmatpush3.bf16.msra.mxu1 %v563_v9 }
  0x4c   :  { %500 = vmatprep.subr.bf16.mxu1 %v688_v0 }
  0x4e   :  { %519 = vmatpush3.bf16.msra.mxu0 %v563_v9 }
  0x4f   :  { %520 = vmatprep.subr.bf16.mxu0 %v688_v0  ;;  %501 = vmatpush3.bf16.msra.mxu1 %v564_v10 }
  0x50   :  { %502 = vmatprep.subr.bf16.mxu1 %v688_v0 }
  0x52   :  { %521 = vmatpush3.bf16.msra.mxu0 %v564_v10 }
  0x53   :  { %522 = vmatprep.subr.bf16.mxu0 %v688_v0  ;;  %503 = vmatpush3.bf16.msra.mxu1 %v565_v11 }
  0x54   :  { %528 = vmatprep.subr.bf16.mxu1 %v688_v0 }
  0x56   :  { %523 = vmatpush3.bf16.msra.mxu0 %v565_v11 }
  0xf9   :  { %v136_v13 = vpop.f32.mrf.mxu0 }
  0xfa   :  { %v137_v14 = vadd.f32 %v431_v12, %v136_v13 }
  0xfb   :  { %v486_v15 = vpop.f32.mrf.mxu0 }
  0xfc   :  { %v142_v16 = vmax.f32 %v137_v14, 0.0 }
  0xfd   :  { %v139_v17 = vpop.f32.mrf.mxu0 }
  0xfe   :  { %v166_v18 = vpack.c.bf16 %v142_v16, %v142_v16 }
  0xff   :  { %v487_v19 = vpop.f32.mrf.mxu0 }
 0x100   :  { %505 = vmatmul.mubr.bf16.vlgmr.msra.gmra.mxu1 %v166_v18 }
 0x101   :  { %544 = vmatprep.mubr.msk.bf16.mxu1 %vm689_vm0, %v688_v0  ;;  %529 = vmatpush3.bf16.msra.mxu1 %v566_v20 }
 0x102   :  { %530 = vmatprep.subr.bf16.mxu1 %v688_v0 }
 0x105   :  { %531 = vmatpush3.bf16.msra.mxu1 %v567_v21 }
 0x106   :  { %532 = vmatprep.subr.bf16.mxu1 %v688_v0 }
 0x109   :  { %533 = vmatpush3.bf16.msra.mxu1 %v568_v22 }
 0x10a   :  { %534 = vmatprep.subr.bf16.mxu1 %v688_v0 }
 0x10d   :  { %535 = vmatpush3.bf16.msra.mxu1 %v569_v23 }
 0x10e   :  { %536 = vmatprep.subr.bf16.mxu1 %v688_v0 }
 0x111   :  { %537 = vmatpush3.bf16.msra.mxu1 %v570_v24 }
 0x112   :  { %538 = vmatprep.subr.bf16.mxu1 %v688_v0 }
 0x115   :  { %539 = vmatpush3.bf16.msra.mxu1 %v571_v25 }
 0x116   :  { %540 = vmatprep.subr.bf16.mxu1 %v688_v0 }
 0x119   :  { %541 = vmatpush3.bf16.msra.mxu1 %v572_v34 }
 0x11a   :  { %542 = vmatprep.subr.bf16.mxu1 %v688_v0 }
 0x11d   :  { %543 = vmatpush3.bf16.msra.mxu1 %v573_v35 }
 0x1c0   :  { %v249_v27 = vpop.f32.mrf.mxu1 }
 0x1c1   :  { %v250_v28 = vadd.f32 %v434_v26, %v249_v27 }
 0x1c2   :  { %v506_v29 = vpop.f32.mrf.mxu1 }
 0x1c3   :  { %v255_v30 = vmax.f32 %v250_v28, 0.0 }
 0x1c4   :  { %v252_v31 = vpop.f32.mrf.mxu1 }
 0x1c5   :  { %v256_v32 = vpack.c.bf16 %v255_v30, %v255_v30 }
 0x1c6   :  { %v507_v33 = vpop.f32.mrf.mxu1 }
 0x1c7   :  { %525 = vmatmul.mubr.bf16.vlgmr.msra.gmra.mxu0 %v256_v32 }
 0x287   :  { %v291_v36 = vpop.f32.mrf.mxu0 }
 0x288   :  { %v292_v37 = vadd.f32 %v434_v26, %v291_v36 }
 0x289   :  { %v526_v38 = vpop.f32.mrf.mxu0 }
 0x28a   :  { %v297_v39 = vmax.f32 %v292_v37, 0.0 }
 0x28b   :  { %v294_v40 = vpop.f32.mrf.mxu0 }
 0x28c   :  { %v298_v41 = vpack.c.bf16 %v297_v39, %v297_v39 }
 0x28d   :  { %v527_v42 = vpop.f32.mrf.mxu0 }
 0x28e   :  { %545 = vmatmul.mubr.bf16.vlgmr.msra.gmra.mxu1 %v298_v41 }
 0x34e   :  { %v404_v44 = vpop.f32.mrf.mxu1 }
 0x34f   :  { %v405_v45 = vadd.f32 %v443_v43, %v404_v44 }
 0x350   :  { %v546_v46 = vpop.f32.mrf.mxu1 }
 0x351   :  { %v452_v47 = vclamps-f32 %v405_v45, 5.0 }
 0x352   :  { %v407_v48 = vpop.f32.mrf.mxu1 }
 0x353   :  { %v412_v49 = vpack.c.bf16 %v452_v47, %v452_v47 }
 0x354   :  { %v547_v50 = vpop.f32.mrf.mxu1 }
 0x355   :  { %413 = vst [vmem:[#allocation10] sm:$0xf] %v412_v49 }
 0x356   :  { %665 = shalt.err (!%p662_p10)
}
 0x357   :  { %423 = dma.vmem_to_hbm [thread:$0]  %s421_s24, 64, %s804_s7, [#allocation4]  }
 0x358   :  { %680 = dma.done.wait [#allocation4], 64  }
 0x359   :  { %681 = vsyncadd [#allocation4], 4294967232 }
 0x35a   :  { %427 = vsyncpa [#allocation3], 1 }
 0x35b   :  { %428 = vsyncpa [#allocation6], 1 }
 0x35c   :  { %429 = vsyncpa [#allocation9], 1 }
 0x35d   :  { %430 = vsyncpa [#allocation4], 1 }

</bundles_post_ra>
